<compile_context>
chip_gen: v7x
topology: tpu7x:2x2x1
jax: 0.10.0
libtpu: 0.0.40
codegen_flags: <defaults>
</compile_context>

<pallas_src>
import jax
import jax.numpy as jnp
from jax.experimental import pallas as pl
from jax.experimental.pallas import tpu as pltpu


def _round_up(x: int, m: int) -> int:
    return ((x + m - 1) // m) * m


def _device_tuning():
    """Per-generation (block-size cap bytes, vmem_limit_bytes or None)."""
    try:
        kind = jax.devices()[0].device_kind.lower()
    except Exception:
        kind = ""
    if "v7" in kind:
        # 3.2 TB/s HBM: amortize the ~0.35us per-step overhead with big blocks.
        # 4 x 6 MiB (double-buffered in+out) = 24 MiB < 32 MiB scoped VMEM.
        return 6 << 20, 32 << 20
    if "v6" in kind:
        return 4 << 20, 32 << 20
    # v5e / unknown: 16 MiB default scoped VMEM -> stay conservative.
    return 2 << 20, None


def _best_2d_factorization(shape):
    """Pick the most lane/sublane-dense (rows, cols) contiguous reshape."""
    best, best_score = None, -1.0
    for i in range(len(shape) + 1):
        rows = 1
        for d in shape[:i]:
            rows *= d
        cols = 1
        for d in shape[i:]:
            cols *= d
        lane_eff = cols / _round_up(max(cols, 1), 128)   # lane-dense stores
        sub_eff = min(rows, 8) / 8.0                     # fill the sublanes
        score = lane_eff * sub_eff
        if score > best_score:
            best_score, best = score, (rows, cols)
    return best


def _ensure_multi_block(rows, cols, tr, tc, row_align):
    """Guarantee >= 2 grid blocks when possible (v7x megacore sharding)."""
    if pl.cdiv(rows, tr) * pl.cdiv(cols, tc) >= 2:
        return tr, tc
    if rows > row_align:
        tr = max(row_align, (rows // 2) // row_align * row_align)
    elif cols > 128:
        tc = max(128, (cols // 2) // 128 * 128)
    return tr, tc


def _qprelu_kernel(x_ref, w_ref, o_ref):
    # x_ref / o_ref: (TR, TC) lane-dense tile.
    # w_ref: (1,) SMEM scalar slope  OR  (TR, 1) VMEM per-row slopes.
    x = x_ref[...]
    if len(w_ref.shape) == 1:
        w = w_ref[0]                       # scalar slope from SMEM
    else:
        w = w_ref[...]                     # (TR, 1) broadcasts over lanes
    # PReLU: x if x >= 0 else w*x  (== relu(x) + w * (-relu(-x)))
    o_ref[...] = jnp.where(x >= 0, x, w * x).astype(o_ref.dtype)


def qprelu(x: jax.Array, weight: jax.Array) -> jax.Array:
    """PReLU forward matching tinynn QPReLU.

    x:      (N, C, H, W) float array (NCHW, like PyTorch)
    weight: (C,) per-channel slopes, or (1,) scalar slope
    """
    n, c, h, w_sp = x.shape
    dtype = x.dtype
    itemsize = jnp.dtype(dtype).itemsize
    # Sublane packing multiple: 8 (f32), 16 (bf16), 32 (int8/fp8).
    row_align = 8 * max(1, 4 // itemsize)
    block_cap, vmem_limit = _device_tuning()

    scalar_weight = weight.size == 1

    if scalar_weight:
        # Layout-agnostic math: pick the most lane-dense contiguous 2-D view.
        rows, cols = _best_2d_factorization(x.shape)
    else:
        assert weight.shape == (c,), f"weight shape {weight.shape} != ({c},)"
        rows, cols = n * c, h * w_sp
        # TODO(synk): per-channel slopes with tiny H*W stay lane-sparse; a
        # regrouped layout would need a full (rows, cols) weight map (2x read
        # traffic), so it is intentionally not done here.

    x2 = x.reshape(rows, cols)  # contiguous reshape: metadata only, no HBM pass

    # --- tile selection: lane tile multiple of 128, per-generation byte cap --
    tc = min(_round_up(cols, 128), 2048)
    max_tr = max(row_align,
                 (block_cap // (tc * itemsize)) // row_align * row_align)
    tr = min(_round_up(rows, row_align), max_tr)
    tr, tc = _ensure_multi_block(rows, cols, tr, tc, row_align)

    grid = (pl.cdiv(rows, tr), pl.cdiv(cols, tc))

    # --- weight argument -----------------------------------------------------
    if scalar_weight:
        w_arg = weight.reshape(1).astype(dtype)
        w_spec = pl.BlockSpec(memory_space=pltpu.MemorySpace.SMEM)
    else:
        w_rows = jnp.broadcast_to(weight.astype(dtype)[None, :], (n, c)).reshape(rows)
        pad_rows = _round_up(rows, row_align)        # tiny, cheap pad only
        if pad_rows != rows:
            w_rows = jnp.pad(w_rows, (0, pad_rows - rows))
        w_arg = w_rows.reshape(pad_rows, 1)
        w_spec = pl.BlockSpec((tr, 1), lambda i, j: (i, 0))

    cp_kwargs = dict(dimension_semantics=("parallel", "parallel"))
    if vmem_limit is not None:
        cp_kwargs["vmem_limit_bytes"] = vmem_limit

    out2 = pl.pallas_call(
        _qprelu_kernel,
        out_shape=jax.ShapeDtypeStruct((rows, cols), dtype),
        grid=grid,
        in_specs=[
            pl.BlockSpec((tr, tc), lambda i, j: (i, j)),
            w_spec,
        ],
        out_specs=pl.BlockSpec((tr, tc), lambda i, j: (i, j)),
        compiler_params=pltpu.CompilerParams(**cp_kwargs),
        cost_estimate=pl.CostEstimate(
            flops=3 * rows * cols,
            transcendentals=0,
            bytes_accessed=2 * rows * cols * itemsize,
        ),
    )(x2, w_arg)

    return out2.reshape(n, c, h, w_sp)


if __name__ == "__main__":
    key = jax.random.PRNGKey(0)
    kx, kw = jax.random.split(key)

    N, C, H, W = 2, 4, 16, 16
    x = jax.random.normal(kx, (N, C, H, W), dtype=jnp.float32)
    # nn.PReLU default init is 0.25; use varied values to exercise the
    # per-channel broadcast.
    weight = 0.25 + 0.1 * jnp.arange(C, dtype=jnp.float32)

    out = qprelu(x, weight)
    jax.block_until_ready(out)

    # Pure-JAX reference of the same math (relu(x) + w * (-relu(-x))).
    ref = jnp.maximum(x, 0.0) + weight.reshape(1, C, 1, 1) * (-jnp.maximum(-x, 0.0))
    assert out.shape == (N, C, H, W)
    assert jnp.allclose(out, ref, atol=1e-6), "per-channel mismatch vs reference"

    # Scalar-weight fast path (weight.numel() == 1 branch).
    w_scalar = jnp.array([0.3], dtype=jnp.float32)
    out_s = qprelu(x, w_scalar)
    jax.block_until_ready(out_s)
    ref_s = jnp.maximum(x, 0.0) + 0.3 * (-jnp.maximum(-x, 0.0))
    assert jnp.allclose(out_s, ref_s, atol=1e-6), "scalar-weight mismatch"

    # Ragged / non-128-aligned shape: exercises the no-pad edge-block path.
    N2, C2, H2, W2 = 2, 3, 5, 7
    x_r = jax.random.normal(kw, (N2, C2, H2, W2), dtype=jnp.float32)
    w_r = 0.1 + 0.05 * jnp.arange(C2, dtype=jnp.float32)
    out_r = qprelu(x_r, w_r)
    jax.block_until_ready(out_r)
    ref_r = jnp.maximum(x_r, 0.0) + w_r.reshape(1, C2, 1, 1) * (-jnp.maximum(-x_r, 0.0))
    assert jnp.allclose(out_r, ref_r, atol=1e-6), "ragged-shape mismatch"

    print("KERNEL_OK")
</pallas_src>

<mosaic_0001>
module attributes {stable_mosaic.version = 11 : i64} {
  func.func @_qprelu_kernel(%arg0: i32, %arg1: i32, %arg2: memref<8x128xf32, #tpu.memory_space<vmem>>, %arg3: memref<8x1xf32, #tpu.memory_space<vmem>>, %arg4: memref<8x128xf32, #tpu.memory_space<vmem>>) attributes {dimension_semantics = [#tpu.dimension_semantics<parallel>, #tpu.dimension_semantics<parallel>], iteration_bounds = array<i64: 1, 2>, scalar_prefetch = 0 : i64, scratch_operands = 0 : i64, tpu.core_type = #tpu.core_type<tc>, window_params = [{transform_indices = @transform_0, window_bounds = array<i64: 8, 128>}, {transform_indices = @transform_1, window_bounds = array<i64: 8, 1>}, {transform_indices = @transform_2, window_bounds = array<i64: 8, 128>}]} {
    %c0 = arith.constant 0 : index
    %c0_0 = arith.constant 0 : index
    %0 = vector.load %arg2[%c0, %c0_0] : memref<8x128xf32, #tpu.memory_space<vmem>>, vector<8x128xf32>
    %c0_1 = arith.constant 0 : index
    %c0_2 = arith.constant 0 : index
    %1 = vector.load %arg3[%c0_1, %c0_2] : memref<8x1xf32, #tpu.memory_space<vmem>>, vector<8x1xf32>
    %cst = arith.constant 0.000000e+00 : f32
    %2 = vector.broadcast %cst : f32 to vector<8x128xf32>
    %3 = arith.cmpf oge, %0, %2 : vector<8x128xf32>
    %4 = vector.broadcast %1 : vector<8x1xf32> to vector<8x128xf32>
    %5 = arith.mulf %4, %0 : vector<8x128xf32>
    %6 = arith.select %3, %0, %5 : vector<8x128xi1>, vector<8x128xf32>
    %c0_3 = arith.constant 0 : index
    %c0_4 = arith.constant 0 : index
    %7 = vector.load %arg4[%c0_3, %c0_4] : memref<8x128xf32, #tpu.memory_space<vmem>>, vector<8x128xf32>
    tpu.vector_store %arg4[%c0_3, %c0_4], %6 {strides = array<i32>} : memref<8x128xf32, #tpu.memory_space<vmem>>, vector<8x128xf32>,
    return
  }
  func.func @transform_0(%arg0: i32, %arg1: i32) -> (i32, i32) {
    %c0_i32 = arith.constant 0 : i32
    return %arg0, %arg1 : i32, i32
  }
  func.func @transform_1(%arg0: i32, %arg1: i32) -> (i32, i32) {
    %c0_i32 = arith.constant 0 : i32
    %c0_i32_0 = arith.constant 0 : i32
    return %arg0, %c0_i32 : i32, i32
  }
  func.func @transform_2(%arg0: i32, %arg1: i32) -> (i32, i32) {
    %c0_i32 = arith.constant 0 : i32
    return %arg0, %arg1 : i32, i32
  }
}

</mosaic_0001>

<bundles_post_ra>
// kernel: tpu_custom_call.1
= control target key start
LH: loop header
LB: loop body
LE: loop exit
PB: predicated region body
PF: predicated region fallthrough
CT: control target
= control target key end

     0   :  { %7 = vsyncpa [#allocation3], 0  ;;  %s703_s0 = inlined_call_operand.hbm [shape: f32[8,256], index: 0, kind: input, shape index: {}]   ;;  %s704_s1 = inlined_call_operand.vmem [shape: f32[8,1], index: 1, kind: input, shape index: {}]   ;;  %s705_s2 = inlined_call_operand.hbm [shape: f32[8,256], index: 2, kind: output, shape index: {}]  }
   0x1   :  { %9 = vsyncpa [#allocation3 + $0x1], 0 }
   0x2   :  { %10 = vsyncpa [#allocation4], 0 }
   0x3   :  { %12 = vsyncpa [#allocation4 + $0x1], 0  ;;  %s528_s9 = smov 0   ;;  %s530_s10 = smov 0  }
   0x4   :  { %s532_s11 = smov 0   ;;  %s534_s12 = smov 0  }
   0x5   :  { %s536_s13 = smov 0   ;;  %s538_s14 = smov 0  }
   0x6 LB: > { %s318_s15 = sadd.s32 4294967295, %s508_s14   ;;  %s319_s16 = sadd.s32 4294967294, %s508_s14   ;;  %s508_s14 = sphi %s538_s14, %s18_s14   ;;  %s504_s13 = sphi %s536_s13, %s721_s13   ;;  %s500_s12 = sphi %s534_s12, %s720_s12   ;;  %s496_s11 = sphi %s532_s11, %s719_s11   ;;  %s492_s10 = sphi %s530_s10, %s718_s10   ;;  %s488_s9 = sphi %s528_s9, %s717_s9  }
   0x7   : > { %s27_s17 = sadd.s32 1, %s504_s13  ;;  %s39_s18 = sadd.s32 1, %s496_s11 }
   0x8   : > { %p28_p0 = scmp.ge.s32.totalorder %s27_s17, 2  ;;  %p46_p1 = scmp.ne.s32.totalorder %s496_s11, %s492_s10 }
   0x9   : > { %p47_p2 = scmp.eq.s32.totalorder %s508_s14, 0  ;;  %p52_p3 = scmp.ne.s32.totalorder %s492_s10, %s488_s9 }
   0xa   : > { %s723_s17 = smov (%p28_p0, %s27_s17), 0  ;;  %p53_p5 = scmp.eq.s32.totalorder %s318_s15, 0 }
   0xb   : > { %p569_p4 = por %p47_p2, %p46_p1  ;;  %s35_s20 = ssub.s32 %s504_s13, %s723_s17 }
   0xc   : > { %p104_p6 = scmp.eq.s32.totalorder %s318_s15, 1  ;;  %p37_p7 = scmp.eq.s32.totalorder %s35_s20, 0 }
   0xd   : > { %p575_p8 = por %p53_p5, %p52_p3  ;;  %p110_p10 = scmp.eq.s32.totalorder %s319_s16, 1 }
   0xe   : > { %p579_p9 = por %p104_p6, %p46_p1  ;;  %p344_p13 = scmp.lt.s32.totalorder %s508_s14, 2 }
   0xf   : > { %s584_s23 = scalar_select %p37_p7, %s496_s11, %s39_s18  }
  0x10   : > { %s709_s22 = scalar_select %p579_p9, 1, 0 }
  0x11   : > { %p586_p11 = por %p110_p10, %p52_p3  ;;  %s137_s25 = sand.u32 1, %s496_s11  }
  0x12   : > { %s323_s26 = sshll.u32 %s137_s25, 3  ;;  %s324_s27 = sshll.u32 %s504_s13, 7 }
  0x13   : > { %s710_s24 = scalar_select %p586_p11, 1, 0 }
  0x14   : > { %s597_s30 = scalar_lea.hbm %s703_s0, %s324_s27  ;;  %s141_s3 = scalar_lea.vmem [#allocation2], %s323_s26 }
  0x15   : > { %s150_s4 = sshll.u32 %s141_s3, 4  ;;  %p603_p0 = pnand %p344_p13, %p569_p4  ;;  %s599_s4 = int_to_ptr.vmem [resolvable:$true] %s150_s4 }
  0x16   : > { %s138_s6 = scalar_lea.sflag [#allocation3], %s137_s25  ;;  %s396_s7 = scalar_lea.hbm %s597_s30, 128 }
  0x17   : > { %p397_p3 = scmp.ne.s32.totalorder %s597_s30, %s396_s7  ;;  %p398_p5 = pneg %p603_p0 }
  0x18   : > { %s401_s16 = scalar_lea.hbm %s703_s0, 256  ;;  %p402_p4 = scmp.lt.u32.totalorder %s597_s30, %s703_s0 }
  0x19   : > { %p399_p6 = pnand %p398_p5, %p397_p3  ;;  %p403_p10 = scmp.lt.u32.totalorder %s401_s16, %s396_s7 }
  0x1a   : > { %p405_p12 = scmp.lt.u32.totalorder %s396_s7, %s597_s30 }
  0x1b   : > { %p400_p7 = pneg %p399_p6  ;;  %p404_p13 = por %p403_p10, %p402_p4 }
  0x1d   : > { %p406_p1 = por %p405_p12, %p404_p13 }
  0x1f   : > { %p407_p2 = pnand %p406_p1, %p400_p7 }
  0x21   : > { %410 = shalt.err (!%p407_p2)
}
  0x22   : > { %s411_s20 = scalar_lea.vmem %s599_s4, 128  ;;  %s510_s25 = smov [#allocation2]  }
  0x23   : > { %p412_p3 = scmp.ne.s32.totalorder %s599_s4, %s411_s20  ;;  %s416_s26 = sshll.u32 %s510_s25, 4  ;;  %s417_s26 = int_to_ptr.vmem [resolvable:$false] %s416_s26 }
  0x24   : > { %s418_s27 = scalar_lea.vmem %s417_s26, 256  ;;  %p419_p9 = scmp.lt.s32.totalorder %s599_s4, %s417_s26 }
  0x25   : > { %p414_p6 = pnand %p412_p3, %p398_p5  ;;  %p420_p4 = scmp.lt.s32.totalorder %s418_s27, %s411_s20 }
  0x27   : > { %p415_p11 = pneg %p414_p6  ;;  %p421_p10 = por %p420_p4, %p419_p9 }
  0x29   : > { %p422_p12 = pnand %p421_p10, %p415_p11 }
  0x2b   : > { %425 = shalt.err (!%p422_p12)
}
  0x2c   : > { %339 = dma.hbm_to_vmem [thread:$0]  (!%p603_p0), %s597_s30, 128, %s599_s4, %s138_s6  }
  0x2d   : > { %p712_p1 = scmp.lt.s32.totalorder %s508_s14, 3  ;;  %p713_p2 = scmp.ge.s32.totalorder %s508_s14, 1 }
  0x2f   : > { %p156_p5 = pnand %p713_p2, %p712_p1 }
  0x30   : > { %s639_s28 = sand.u32 (!%p156_p5), 1, %s492_s10  }
  0x31   : > { %159 = sbr.rel (%p156_p5) target bundleno = 204 (0xcc), region = 28  ;;  %s326_s29 = sshll.u32 (!%p156_p5), %s639_s28, 3 }
  0x32   : > { %s162_s3 = scalar_lea.sflag (!%p156_p5), [#allocation3], %s639_s28  ;;  %s165_s7 = scalar_lea.vmem (!%p156_p5), [#allocation2], %s326_s29 }
  0x38   : > { %479 = dma.done.wait (%p575_p8), %s162_s3, 128  }
  0x39   : > { %481 = vsyncadd (%p575_p8), %s162_s3, 4294967168  ;;  %v511_v0 = vmov 0   ;;  %v195_v1 = vld [vmem:[%s704_s1] sm:$0xff]  ;;  %s329_s5 = sshll.u32 %s500_s12, 7  ;;  %s189_s6 = scalar_lea.vmem [#allocation5], %s326_s29 }
  0x3a   : > { %395 = vset.pattern.permute.xlu0 %v511_v0  ;;  %v194_v2 = vld [vmem:[%s165_s7] sm:$0xff]  ;;  %s221_s8 = sshll.u32 %s189_s6, 4  ;;  %s654_s16 = scalar_lea.hbm %s705_s2, %s329_s5  ;;  %s656_s8 = int_to_ptr.vmem [resolvable:$true] %s221_s8 }
  0x3b   : > { %199 = vperm.xlu0 %395, %v195_v1   ;;  %vm196_vm0 = vcmp.ge.f32.partialorder %v194_v2, 0.0  ;;  %s206_s18 = scalar_lea.sflag [#allocation4], %s639_s28  ;;  %s426_s19 = scalar_lea.vmem %s656_s8, 128 }
  0x3c   : > { %p427_p8 = scmp.ne.s32.totalorder %s656_s8, %s426_s19  ;;  %p714_p9 = scmp.ne.s32.totalorder %s709_s22, 0 }
  0x3d   : > { %s512_s12 = smov [#allocation5]  }
  0x3e   : > { %p428_p11 = pnand %p427_p8, %p714_p9  ;;  %s430_s20 = sshll.u32 %s512_s12, 4  ;;  %s431_s20 = int_to_ptr.vmem [resolvable:$false] %s430_s20 }
  0x3f   : > { %s432_s25 = scalar_lea.vmem %s431_s20, 256  ;;  %p433_p7 = scmp.lt.s32.totalorder %s656_s8, %s431_s20 }
  0x40   : > { %p429_p0 = pneg %p428_p11  ;;  %p434_p13 = scmp.lt.s32.totalorder %s432_s25, %s426_s19 }
  0x42   : > { %p435_p3 = por %p434_p13, %p433_p7 }
  0x44   : > { %p436_p6 = pnand %p435_p3, %p429_p0 }
  0xba   : > { %v200_v3 = vpop.permute.xlu0 %199 }
  0xbb   : > { %v202_v4 = vmul.f32 %v200_v3, %v194_v2 }
  0xbd   : > { %v203_v5 = vsel %vm196_vm0, %v194_v2, %v202_v4 }
  0xbe   : > { %204 = vst [vmem:[%s189_s6] sm:$0xff] %v203_v5 }
  0xbf   : > { %439 = shalt.err (!%p436_p6)
}
  0xc0   : > { %s440_s26 = scalar_lea.hbm %s654_s16, 128  ;;  %s444_s29 = scalar_lea.hbm %s705_s2, 256 }
  0xc1   : > { %p441_p4 = scmp.ne.s32.totalorder %s654_s16, %s440_s26  ;;  %p445_p1 = scmp.lt.u32.totalorder %s654_s16, %s705_s2 }
  0xc2   : > { %p446_p2 = scmp.lt.u32.totalorder %s444_s29, %s440_s26  ;;  %p448_p8 = scmp.lt.u32.totalorder %s440_s26, %s654_s16 }
  0xc3   : > { %p442_p10 = pnand %p441_p4, %p714_p9 }
  0xc4   : > { %p447_p5 = por %p446_p2, %p445_p1 }
  0xc5   : > { %p443_p12 = pneg %p442_p10 }
  0xc6   : > { %p449_p11 = por %p448_p8, %p447_p5 }
  0xc8   : > { %p450_p0 = pnand %p449_p11, %p443_p12 }
  0xca   : > { %453 = shalt.err (!%p450_p0)
}
  0xcb   : > { %334 = dma.vmem_to_hbm [thread:$0]  (%p714_p9), %s656_s8, 128, %s654_s16, %s206_s18  }
  0xcc PF: > { %s233_s30 = sand.u32 1, %s488_s9   ;;  %p715_p7 = scmp.ne.s32.totalorder %s710_s24, 0 }
  0xcd   : > { %p716_p13 = scmp.ge.s32.totalorder %s508_s14, 2  ;;  %s234_s4 = scalar_lea.sflag [#allocation4], %s233_s30 }
  0xcf   : > { %p341_p3 = pnand %p716_p13, %p715_p7 }
  0xd1   : > { %483 = dma.done.wait (!%p341_p3), %s234_s4, 128  }
  0xd2   : > { %485 = vsyncadd (!%p341_p3), %s234_s4, 4294967168  ;;  %s18_s14 = sadd.s32 1, %s508_s14   ;;  %s717_s9 = smov %s492_s10 }
  0xd3   : > { %p15_p6 = scmp.ge.s32.totalorder %s18_s14, 4   ;;  %s718_s10 = smov %s496_s11 }
  0xd4   : > { %s719_s11 = smov %s584_s23  ;;  %s720_s12 = smov %s504_s13 }
  0xd5   : > { %s721_s13 = smov %s723_s17  ;;  %17 = sbr.rel (!%p15_p6) target bundleno = 6 (0x6), region = 76 }
  0xdc   :  { %239 = vsyncpa [#allocation3], 1 }
  0xdd   :  { %241 = vsyncpa [#allocation3 + $0x1], 1 }
  0xde   :  { %242 = vsyncpa [#allocation4], 1 }
  0xdf   :  { %244 = vsyncpa [#allocation4 + $0x1], 1 }

</bundles_post_ra>
